<compile_context>
chip_gen: v5e
topology: v5e:2x2
jax: 0.10.0
libtpu: 0.0.40
codegen_flags: <defaults>
</compile_context>

<pallas_src>
import functools
import math

import jax
import jax.numpy as jnp
from jax.experimental import pallas as pl
from jax.experimental.pallas import tpu as pltpu


def _frm_reduce_kernel(x_ref, a_ref, scale_ref, sum_s, max_s, *,
                       inv_c, logit_p, eps):
    """Phase 1: channel reduce -> conv-as-matmul -> BN/sigmoid/threshold fold -> scale.

    x_ref:     (N, c_tile, HW) f32 block (grid over channel tiles, reduction axis).
    a_ref:     (2*HW, HW) bf16 fused Toeplitz conv matrix ([A_avg; A_max]), VMEM-resident.
    scale_ref: (N, HW) f32 output, written only at the last channel step.
    sum_s/max_s: (N, HW) f32 VMEM scratch accumulators.
    """
    c = pl.program_id(0)
    x = x_ref[...].astype(jnp.float32)                    # (N, c_tile, HW)
    part_sum = jnp.sum(x, axis=1)                         # (N, HW)
    part_max = jnp.max(x, axis=1)                         # (N, HW)

    @pl.when(c == 0)
    def _():
        sum_s[...] = part_sum
        max_s[...] = part_max

    @pl.when(c > 0)
    def _():
        sum_s[...] = sum_s[...] + part_sum
        max_s[...] = jnp.maximum(max_s[...], part_max)

    @pl.when(c == pl.num_programs(0) - 1)
    def _():
        avg = sum_s[...] * inv_c                          # channel mean  (N, HW)
        mx = max_s[...]                                   # channel max   (N, HW)
        # Conv2d(2 -> 1, k=7, pad=3, bias=False) as ONE fused bf16 MXU matmul.
        y = jnp.concatenate([avg, mx], axis=-1).astype(jnp.bfloat16)        # (N, 2*HW)
        conv = jnp.dot(y, a_ref[...], preferred_element_type=jnp.float32)   # (N, HW)
        # BN (training-mode batch stats, affine=(1,0)) + sigmoid + threshold, folded:
        #   sigmoid((conv - mu) * rsqrt(var + eps)) > p  <=>  conv > mu + logit(p)*sqrt(var+eps)
        total = jnp.float32(conv.shape[0] * conv.shape[1])
        mu = jnp.sum(conv) / total
        d = conv - mu
        var = jnp.sum(d * d) / total                      # two-pass, biased variance
        thr = mu + logit_p * jnp.sqrt(var + eps)
        # gate in {0,1}; out = relu(x*gate + x) = relu(x * scale) with scale in {1,2}
        scale_ref[...] = jnp.where(conv > thr, 1.0, 2.0).astype(scale_ref.dtype)


def _frm_apply_kernel(x_ref, scale_ref, out_ref):
    """Phase 2: out = relu(x * scale), scale broadcast over the channel dim."""
    s = scale_ref[...]                                    # (n_tile, HW)
    out_ref[...] = jnp.maximum(x_ref[...] * s[:, None, :], 0.0).astype(out_ref.dtype)


def frm_prepare_weights(conv_w, H, W):
    """Build the fused (2*HW, HW) bf16 conv-as-matmul matrix [A_avg; A_max].

    A[c*HW + t, s] = conv_w[c, ki, kj] whenever zero-padded cross-correlation output
    pixel s reads input pixel t via tap (ki, kj).  Depends only on (conv_w, H, W):
    build ONCE and reuse across forwards (hoisted per review #8).
    """
    Cin, K, _ = conv_w.shape
    pad = (K - 1) // 2
    HW = H * W

    i = jnp.arange(H)[:, None, None, None]                # output row
    j = jnp.arange(W)[None, :, None, None]                # output col
    ki = jnp.arange(K)[None, None, :, None]
    kj = jnp.arange(K)[None, None, None, :]
    ii = i + ki - pad                                     # input row
    jj = j + kj - pad                                     # input col
    valid = (ii >= 0) & (ii < H) & (jj >= 0) & (jj < W)   # (H, W, K, K)

    rows = jnp.where(valid, ii * W + jj, 0).reshape(-1)                 # input flat idx t
    cols = jnp.broadcast_to(i * W + j, valid.shape).reshape(-1)         # output flat idx s

    mats = []
    for c in range(Cin):
        vals = jnp.where(valid, jnp.broadcast_to(conv_w[c], (H, W, K, K)), 0.0)
        a_c = jnp.zeros((HW, HW), jnp.float32).at[rows, cols].add(
            vals.reshape(-1).astype(jnp.float32))
        mats.append(a_c)
    return jnp.concatenate(mats, axis=0).astype(jnp.bfloat16)           # (Cin*HW, HW)


def _channel_tile(C):
    # Second-to-last block dim: multiple of 8 or the full extent.
    if C % 8 != 0:
        return C
    for t in (64, 32, 16, 8):
        if C % t == 0:
            return t
    return C


def _batch_tile(N):
    # n_tile is also the second-to-last dim of the (n_tile, HW) scale block:
    # multiple of 8 or the full extent.
    return 8 if N % 8 == 0 else N


def frm_forward(x, a_mat, *, p=0.5, eps=1e-5):
    """x: (N, C, H, W) f32; a_mat: fused (2*H*W, H*W) bf16 matrix from frm_prepare_weights."""
    assert 0.0 < p < 1.0, "threshold p must be in (0, 1) (logit fold)"
    N, C, H, W = x.shape
    HW = H * W
    assert a_mat.shape == (2 * HW, HW)
    # Lane-dense layout; TODO(synk): pad HW up to a multiple of 128 (ideally 256) for
    # non-aligned spatial sizes such as 14x14 instead of asserting (review #6).
    assert HW % 128 == 0, "HW must be a multiple of 128 (lane-dense layout)"

    x_flat = x.reshape(N, C, HW)
    c_tile = _channel_tile(C)
    n_tile = _batch_tile(N)
    vmem_limit = 64 * 1024 * 1024

    # ---- Phase 1: channel reduce -> conv -> BN/threshold fold -> gate scale --------
    reduce_kernel = functools.partial(
        _frm_reduce_kernel,
        inv_c=1.0 / C,
        logit_p=float(math.log(p / (1.0 - p))),
        eps=float(eps))
    scale = pl.pallas_call(
        reduce_kernel,
        out_shape=jax.ShapeDtypeStruct((N, HW), jnp.float32),
        grid_spec=pltpu.PrefetchScalarGridSpec(
            num_scalar_prefetch=0,
            grid=(C // c_tile,),
            in_specs=[
                pl.BlockSpec((N, c_tile, HW), lambda c: (0, c, 0)),
                pl.BlockSpec((2 * HW, HW), lambda c: (0, 0)),   # A resident across grid
            ],
            out_specs=pl.BlockSpec((N, HW), lambda c: (0, 0)),
            scratch_shapes=[pltpu.VMEM((N, HW), jnp.float32),
                            pltpu.VMEM((N, HW), jnp.float32)]),
        compiler_params=pltpu.CompilerParams(
            dimension_semantics=("arbitrary",),
            vmem_limit_bytes=vmem_limit),
    )(x_flat, a_mat)

    # ---- Phase 2: out = relu(x * scale), pipelined over (batch, channel) tiles -----
    out_flat = pl.pallas_call(
        _frm_apply_kernel,
        out_shape=jax.ShapeDtypeStruct((N, C, HW), x.dtype),
        grid_spec=pltpu.PrefetchScalarGridSpec(
            num_scalar_prefetch=0,
            grid=(N // n_tile, C // c_tile),
            in_specs=[
                pl.BlockSpec((n_tile, c_tile, HW), lambda n, c: (n, c, 0)),
                pl.BlockSpec((n_tile, HW), lambda n, c: (n, 0)),
            ],
            out_specs=pl.BlockSpec((n_tile, c_tile, HW), lambda n, c: (n, c, 0))),
        compiler_params=pltpu.CompilerParams(
            dimension_semantics=("parallel", "parallel"),
            vmem_limit_bytes=vmem_limit),
    )(x_flat, scale)

    return out_flat.reshape(N, C, H, W)


def frm_reference(x, conv_w, *, p=0.5, eps=1e-5):
    """Pure-JAX reference mirroring the PyTorch forward (training-mode BN).
    Also returns the sigmoid map so the test can tolerate gate flips near the
    (discontinuous) threshold boundary."""
    K = conv_w.shape[-1]
    pad = (K - 1) // 2
    avg = jnp.mean(x, axis=1, keepdims=True)
    mx = jnp.max(x, axis=1, keepdims=True)
    y = jnp.concatenate([avg, mx], axis=1)                # (N, 2, H, W)
    conv = jax.lax.conv_general_dilated(
        y, conv_w[None], window_strides=(1, 1), padding=[(pad, pad), (pad, pad)],
        dimension_numbers=("NCHW", "OIHW", "NCHW"))       # (N, 1, H, W)
    mu = jnp.mean(conv)
    var = jnp.mean((conv - mu) ** 2)
    bn = (conv - mu) / jnp.sqrt(var + eps)
    sig = jax.nn.sigmoid(bn)
    gate = jnp.where(sig > p, 0.0, 1.0)
    out = jnp.maximum(x * gate + x, 0.0)
    return out, sig


if __name__ == "__main__":
    key = jax.random.PRNGKey(0)
    kx, kw = jax.random.split(key)

    N, C, H, W = 2, 4, 16, 16
    K = 7
    P_THRESH = 0.5

    x = jax.random.normal(kx, (N, C, H, W), dtype=jnp.float32)

    # Deterministic Conv2d(2, 1, 7, bias=False) weight: kaiming-uniform-style bound.
    fan_in = 2 * K * K
    bound = 1.0 / math.sqrt(fan_in)
    conv_w = jax.random.uniform(kw, (2, K, K), jnp.float32, -bound, bound)

    a_mat = frm_prepare_weights(conv_w, H, W)   # built ONCE, reused across forwards
    out = frm_forward(x, a_mat, p=P_THRESH)
    out = jax.block_until_ready(out)

    ref_out, ref_sig = frm_reference(x, conv_w, p=P_THRESH)
    assert out.shape == (N, C, H, W)

    # Boundary-tolerant comparison: the hard gate is discontinuous and the kernel's
    # bf16 MXU conv (documented approximation) can shift decisions exactly at the
    # threshold, so mismatches are excused only where the reference sigmoid sits in a
    # narrow band around the threshold.
    close = jnp.isclose(out, ref_out, atol=1e-4, rtol=1e-4)
    boundary = jnp.abs(ref_sig - P_THRESH) < 1e-2          # (N,1,H,W), broadcasts over C
    assert bool(jnp.all(close | boundary)), "mismatch vs JAX reference"

    print("KERNEL_OK")
</pallas_src>

<mosaic_0001>
module attributes {stable_mosaic.version = 11 : i64} {
  func.func @_frm_reduce_kernel(%arg0: i32, %arg1: memref<2x4x256xf32, #tpu.memory_space<vmem>>, %arg2: memref<512x256xbf16, #tpu.memory_space<vmem>>, %arg3: memref<2x256xf32, #tpu.memory_space<vmem>>, %arg4: memref<2x256xf32, #tpu.memory_space<vmem>>, %arg5: memref<2x256xf32, #tpu.memory_space<vmem>>) attributes {dimension_semantics = [#tpu.dimension_semantics<arbitrary>], iteration_bounds = array<i64: 1>, scalar_prefetch = 0 : i64, scratch_operands = 2 : i64, tpu.core_type = #tpu.core_type<tc>, window_params = [{transform_indices = @transform_0, window_bounds = array<i64: 2, 4, 256>}, {pipeline_mode = #tpu.pipeline_mode<synchronous>, transform_indices = @transform_1, window_bounds = array<i64: 512, 256>}, {pipeline_mode = #tpu.pipeline_mode<synchronous>, transform_indices = @transform_2, window_bounds = array<i64: 2, 256>}]} {
    %c0 = arith.constant 0 : index
    %c0_0 = arith.constant 0 : index
    %c0_1 = arith.constant 0 : index
    %0 = vector.load %arg1[%c0, %c0_0, %c0_1] : memref<2x4x256xf32, #tpu.memory_space<vmem>>, vector<2x4x256xf32>
    %cst = arith.constant dense<0.000000e+00> : vector<2x256xf32>
    %1 = vector.multi_reduction <add>, %0, %cst [1] : vector<2x4x256xf32> to vector<2x256xf32>
    %cst_2 = arith.constant dense<0xFF800000> : vector<2x256xf32>
    %2 = vector.multi_reduction <maximumf>, %0, %cst_2 [1] : vector<2x4x256xf32> to vector<2x256xf32>
    %c0_i32 = arith.constant 0 : i32
    %3 = arith.cmpi eq, %arg0, %c0_i32 : i32
    %4 = arith.extui %3 : i1 to i32
    %c0_i32_3 = arith.constant 0 : i32
    %5 = arith.cmpi ne, %4, %c0_i32_3 : i32
    scf.if %5 {
      %c0_8 = arith.constant 0 : index
      %c0_9 = arith.constant 0 : index
      %12 = vector.load %arg4[%c0_8, %c0_9] : memref<2x256xf32, #tpu.memory_space<vmem>>, vector<2x256xf32>
      tpu.vector_store %arg4[%c0_8, %c0_9], %1 {strides = array<i32>} : memref<2x256xf32, #tpu.memory_space<vmem>>, vector<2x256xf32>,
      %c0_10 = arith.constant 0 : index
      %c0_11 = arith.constant 0 : index
      %13 = vector.load %arg5[%c0_10, %c0_11] : memref<2x256xf32, #tpu.memory_space<vmem>>, vector<2x256xf32>
      tpu.vector_store %arg5[%c0_10, %c0_11], %2 {strides = array<i32>} : memref<2x256xf32, #tpu.memory_space<vmem>>, vector<2x256xf32>,
    } else {
    }
    %c0_i32_4 = arith.constant 0 : i32
    %6 = arith.cmpi sgt, %arg0, %c0_i32_4 : i32
    %7 = arith.extui %6 : i1 to i32
    %c0_i32_5 = arith.constant 0 : i32
    %8 = arith.cmpi ne, %7, %c0_i32_5 : i32
    scf.if %8 {
      %c0_8 = arith.constant 0 : index
      %c0_9 = arith.constant 0 : index
      %12 = vector.load %arg4[%c0_8, %c0_9] : memref<2x256xf32, #tpu.memory_space<vmem>>, vector<2x256xf32>
      %13 = arith.addf %12, %1 : vector<2x256xf32>
      %c0_10 = arith.constant 0 : index
      %c0_11 = arith.constant 0 : index
      %14 = vector.load %arg4[%c0_10, %c0_11] : memref<2x256xf32, #tpu.memory_space<vmem>>, vector<2x256xf32>
      tpu.vector_store %arg4[%c0_10, %c0_11], %13 {strides = array<i32>} : memref<2x256xf32, #tpu.memory_space<vmem>>, vector<2x256xf32>,
      %c0_12 = arith.constant 0 : index
      %c0_13 = arith.constant 0 : index
      %15 = vector.load %arg5[%c0_12, %c0_13] : memref<2x256xf32, #tpu.memory_space<vmem>>, vector<2x256xf32>
      %16 = arith.maximumf %15, %2 : vector<2x256xf32>
      %c0_14 = arith.constant 0 : index
      %c0_15 = arith.constant 0 : index
      %17 = vector.load %arg5[%c0_14, %c0_15] : memref<2x256xf32, #tpu.memory_space<vmem>>, vector<2x256xf32>
      tpu.vector_store %arg5[%c0_14, %c0_15], %16 {strides = array<i32>} : memref<2x256xf32, #tpu.memory_space<vmem>>, vector<2x256xf32>,
    } else {
    }
    %c0_i32_6 = arith.constant 0 : i32
    %9 = arith.cmpi eq, %arg0, %c0_i32_6 : i32
    %10 = arith.extui %9 : i1 to i32
    %c0_i32_7 = arith.constant 0 : i32
    %11 = arith.cmpi ne, %10, %c0_i32_7 : i32
    scf.if %11 {
      %c0_8 = arith.constant 0 : index
      %c0_9 = arith.constant 0 : index
      %12 = vector.load %arg4[%c0_8, %c0_9] : memref<2x256xf32, #tpu.memory_space<vmem>>, vector<2x256xf32>
      %cst_10 = arith.constant 2.500000e-01 : f32
      %13 = vector.broadcast %cst_10 : f32 to vector<2x256xf32>
      %14 = arith.mulf %12, %13 : vector<2x256xf32>
      %c0_11 = arith.constant 0 : index
      %c0_12 = arith.constant 0 : index
      %15 = vector.load %arg5[%c0_11, %c0_12] : memref<2x256xf32, #tpu.memory_space<vmem>>, vector<2x256xf32>
      %16 = tpu.concatenate %14, %15 in 1 : vector<2x256xf32>, vector<2x256xf32> -> vector<2x512xf32>
      %17 = arith.truncf %16 : vector<2x512xf32> to vector<2x512xbf16>
      %c0_13 = arith.constant 0 : index
      %c0_14 = arith.constant 0 : index
      %18 = vector.load %arg2[%c0_13, %c0_14] : memref<512x256xbf16, #tpu.memory_space<vmem>>, vector<512x256xbf16>
      %cst_15 = arith.constant dense<0.000000e+00> : vector<2x256xf32>
      %19 = tpu.matmul %17, %18, %cst_15 {dimension_numbers = #tpu.dot_dimension_numbers<[1], [0], [0], [1], [0, 0, 1, 1], [], []>} : vector<2x512xbf16>, vector<512x256xbf16>, vector<2x256xf32> -> vector<2x256xf32>
      %20 = vector.shape_cast %19 : vector<2x256xf32> to vector<1x2x256xf32>
      %cst_16 = arith.constant dense<0.000000e+00> : vector<1xf32>
      %21 = vector.multi_reduction <add>, %20, %cst_16 [1, 2] : vector<1x2x256xf32> to vector<1xf32>
      %22 = vector.shape_cast %21 : vector<1xf32> to vector<1x1x1xf32>
      %23 = vector.extract %22[0, 0, 0] : f32 from vector<1x1x1xf32>
      %cst_17 = arith.constant 5.120000e+02 : f32
      %24 = arith.divf %23, %cst_17 : f32
      %25 = vector.broadcast %24 : f32 to vector<2x256xf32>
      %26 = arith.subf %19, %25 : vector<2x256xf32>
      %27 = arith.mulf %26, %26 : vector<2x256xf32>
      %28 = vector.shape_cast %27 : vector<2x256xf32> to vector<1x2x256xf32>
      %cst_18 = arith.constant dense<0.000000e+00> : vector<1xf32>
      %29 = vector.multi_reduction <add>, %28, %cst_18 [1, 2] : vector<1x2x256xf32> to vector<1xf32>
      %30 = vector.shape_cast %29 : vector<1xf32> to vector<1x1x1xf32>
      %31 = vector.extract %30[0, 0, 0] : f32 from vector<1x1x1xf32>
      %cst_19 = arith.constant 5.120000e+02 : f32
      %32 = arith.divf %31, %cst_19 : f32
      %cst_20 = arith.constant 9.99999974E-6 : f32
      %33 = arith.addf %32, %cst_20 : f32
      %34 = math.sqrt %33 : f32
      %cst_21 = arith.constant 0.000000e+00 : f32
      %35 = arith.mulf %cst_21, %34 : f32
      %36 = arith.addf %24, %35 : f32
      %37 = vector.broadcast %36 : f32 to vector<2x256xf32>
      %38 = arith.cmpf ogt, %19, %37 : vector<2x256xf32>
      %cst_22 = arith.constant 1.000000e+00 : f32
      %cst_23 = arith.constant 2.000000e+00 : f32
      %39 = vector.broadcast %cst_22 : f32 to vector<2x256xf32>
      %40 = vector.broadcast %cst_23 : f32 to vector<2x256xf32>
      %41 = arith.select %38, %39, %40 : vector<2x256xi1>, vector<2x256xf32>
      %c0_24 = arith.constant 0 : index
      %c0_25 = arith.constant 0 : index
      %42 = vector.load %arg3[%c0_24, %c0_25] : memref<2x256xf32, #tpu.memory_space<vmem>>, vector<2x256xf32>
      tpu.vector_store %arg3[%c0_24, %c0_25], %41 {strides = array<i32>} : memref<2x256xf32, #tpu.memory_space<vmem>>, vector<2x256xf32>,
    } else {
    }
    return
  }
  func.func @transform_0(%arg0: i32) -> (i32, i32, i32) {
    %c0_i32 = arith.constant 0 : i32
    %c0_i32_0 = arith.constant 0 : i32
    %c0_i32_1 = arith.constant 0 : i32
    return %c0_i32, %arg0, %c0_i32_0 : i32, i32, i32
  }
  func.func @transform_1(%arg0: i32) -> (i32, i32) {
    %c0_i32 = arith.constant 0 : i32
    %c0_i32_0 = arith.constant 0 : i32
    %c0_i32_1 = arith.constant 0 : i32
    return %c0_i32, %c0_i32_0 : i32, i32
  }
  func.func @transform_2(%arg0: i32) -> (i32, i32) {
    %c0_i32 = arith.constant 0 : i32
    %c0_i32_0 = arith.constant 0 : i32
    %c0_i32_1 = arith.constant 0 : i32
    return %c0_i32, %c0_i32_0 : i32, i32
  }
}

</mosaic_0001>

<bundles_post_ra>
// kernel: tpu_custom_call.1
= control target key start
LH: loop header
LB: loop body
LE: loop exit
PB: predicated region body
PF: predicated region fallthrough
CT: control target
= control target key end

     0   :  { %7 = vsyncpa [#allocation5], 0  ;;  %s1312_s0 = inlined_call_operand.hbm [shape: f32[2,4,256], index: 0, kind: input, shape index: {}]   ;;  %s1313_s1 = inlined_call_operand.hbm [shape: bf16[512,256], index: 1, kind: input, shape index: {}]   ;;  %s1314_s2 = inlined_call_operand.hbm [shape: f32[2,256], index: 2, kind: output, shape index: {}]  }
   0x1   :  { %8 = vsyncpa [#allocation8], 0 }
   0x2   :  { %9 = vsyncpa [#allocation6], 0  ;;  %s14_s11 = sshll.u32 %s1312_s0, 4  ;;  %s1242_s12 = smov [#allocation4]   ;;  %s15_s11 = int_to_ptr.hbm [resolvable:$true] %s14_s11 }
   0x3   :  { %s16_s13 = sshll.u32 %s1242_s12, 4  ;;  %s27_s16 = sshll.u32 %s1313_s1, 4  ;;  %s17_s13 = int_to_ptr.vmem [resolvable:$true] %s16_s13  ;;  %s28_s16 = int_to_ptr.hbm [resolvable:$true] %s27_s16 }
   0x4   :  { %s1243_s17 = smov 128   ;;  %s1244_s18 = smov 8  }
   0x5   :  { %22 = dma.hbm_to_vmem [thread:$0]  %s15_s11, 256, %s17_s13, [#allocation5], %s1243_s17, %s1243_s17, %s1244_s18  }
   0x6   :  { %s1245_s19 = smov [#allocation7]  }
   0x7   :  { %s29_s20 = sshll.u32 %s1245_s19, 4  ;;  %s30_s20 = int_to_ptr.vmem [resolvable:$true] %s29_s20 }
   0x8   :  { %35 = dma.hbm_to_vmem [thread:$0]  %s28_s16, 8192, %s30_s20, [#allocation8], %s1243_s17, %s1243_s17, %s1244_s18  }
   0x9   :  { %1236 = dma.done.wait [#allocation5], 256  }
   0xa   :  { %1237 = vsyncadd [#allocation5], 4294967040 }
   0xb   :  { %1238 = dma.done.wait [#allocation8], 8192  }
   0xc   :  { %1239 = vsyncadd [#allocation8], 4294959104  ;;  %v883_v0 = vld [vmem:[#allocation7 + $0x70] sm:$0xf]  ;;  %v1096_v1 = vld [vmem:[#allocation7 + $0x74] sm:$0xf0] }
   0xd   :  { %v947_v2 = vld [vmem:[#allocation7 + $0xf0] sm:$0xf]  ;;  %v884_v3 = vor.u32 %v1096_v1, %v883_v0  ;;  %v1112_v4 = vld [vmem:[#allocation7 + $0xf4] sm:$0xf0]  ;;  %v875_v5 = vld [vmem:[#allocation7 + $0x60] sm:$0xf] }
   0xe   :  { %v1094_v6 = vld [vmem:[#allocation7 + $0x64] sm:$0xf0]  ;;  %v948_v7 = vor.u32 %v1112_v4, %v947_v2  ;;  %v939_v8 = vld [vmem:[#allocation7 + $0xe0] sm:$0xf]  ;;  %v1011_v10 = vld [vmem:[#allocation7 + $0x170] sm:$0xf] }
   0xf   :  { %v1110_v9 = vld [vmem:[#allocation7 + $0xe4] sm:$0xf0]  ;;  %627 = vmatpush.bf16.msra.mxu0 %v884_v3  ;;  %v876_v11 = vor.u32 %v1094_v6, %v875_v5  ;;  %v1128_v12 = vld [vmem:[#allocation7 + $0x174] sm:$0xf0]  ;;  %v1075_v13 = vld [vmem:[#allocation7 + $0x1f0] sm:$0xf] }
  0x10   :  { %v1144_v14 = vld [vmem:[#allocation7 + $0x1f4] sm:$0xf0]  ;;  %640 = vmatpush.bf16.msra.mxu1 %v948_v7  ;;  %v940_v15 = vor.u32 %v1110_v9, %v939_v8  ;;  %v1012_v16 = vor.u32 %v1128_v12, %v1011_v10  ;;  %v867_v18 = vld [vmem:[#allocation7 + $0x50] sm:$0xf]  ;;  %v1003_v22 = vld [vmem:[#allocation7 + $0x160] sm:$0xf] }
  0x11   :  { %v1076_v17 = vor.u32 %v1144_v14, %v1075_v13  ;;  %v1092_v19 = vld [vmem:[#allocation7 + $0x54] sm:$0xf0]  ;;  %v931_v20 = vld [vmem:[#allocation7 + $0xd0] sm:$0xf]  ;;  %v1126_v23 = vld [vmem:[#allocation7 + $0x164] sm:$0xf0] }
  0x12   :  { %v1108_v21 = vld [vmem:[#allocation7 + $0xd4] sm:$0xf0]  ;;  %653 = vmatpush.bf16.msra.mxu2 %v1012_v16  ;;  %v1004_v24 = vor.u32 %v1126_v23, %v1003_v22  ;;  %v1067_v25 = vld [vmem:[#allocation7 + $0x1e0] sm:$0xf]  ;;  %v1142_v26 = vld [vmem:[#allocation7 + $0x1e4] sm:$0xf0]  ;;  %v868_v27 = vor.u32 %v1092_v19, %v867_v18 }
  0x13   :  { %666 = vmatpush.bf16.msra.mxu3 %v1076_v17  ;;  %628 = vmatpush.bf16.msra.mxu0 %v876_v11  ;;  %v1068_v28 = vor.u32 %v1142_v26, %v1067_v25  ;;  %v859_v29 = vld [vmem:[#allocation7 + $0x40] sm:$0xf]  ;;  %v1090_v30 = vld [vmem:[#allocation7 + $0x44] sm:$0xf0]  ;;  %v932_v31 = vor.u32 %v1108_v21, %v931_v20  ;;  %v995_v32 = vld [vmem:[#allocation7 + $0x150] sm:$0xf] }
  0x14   :  { %641 = vmatpush.bf16.msra.mxu1 %v940_v15  ;;  %v1124_v33 = vld [vmem:[#allocation7 + $0x154] sm:$0xf0]  ;;  %v1059_v34 = vld [vmem:[#allocation7 + $0x1d0] sm:$0xf]  ;;  %v923_v35 = vld [vmem:[#allocation7 + $0xc0] sm:$0xf]  ;;  %v860_v41 = vor.u32 %v1090_v30, %v859_v29 }
  0x15   :  { %v1106_v36 = vld [vmem:[#allocation7 + $0xc4] sm:$0xf0]  ;;  %v1140_v37 = vld [vmem:[#allocation7 + $0x1d4] sm:$0xf0]  ;;  %v996_v38 = vor.u32 %v1124_v33, %v995_v32  ;;  %v987_v40 = vld [vmem:[#allocation7 + $0x140] sm:$0xf] }
  0x16   :  { %654 = vmatpush.bf16.msra.mxu2 %v1004_v24  ;;  %v1060_v39 = vor.u32 %v1140_v37, %v1059_v34  ;;  %v1122_v42 = vld [vmem:[#allocation7 + $0x144] sm:$0xf0]  ;;  %v1051_v43 = vld [vmem:[#allocation7 + $0x1c0] sm:$0xf]  ;;  %v924_v45 = vor.u32 %v1106_v36, %v923_v35  ;;  %v851_v46 = vld [vmem:[#allocation7 + $0x30] sm:$0xf] }
  0x17   :  { %667 = vmatpush.bf16.msra.mxu3 %v1068_v28  ;;  %629 = vmatpush.bf16.msra.mxu0 %v868_v27  ;;  %v1138_v44 = vld [vmem:[#allocation7 + $0x1c4] sm:$0xf0]  ;;  %v1088_v47 = vld [vmem:[#allocation7 + $0x34] sm:$0xf0]  ;;  %v915_v48 = vld [vmem:[#allocation7 + $0xb0] sm:$0xf]  ;;  %v988_v50 = vor.u32 %v1122_v42, %v987_v40 }
  0x18   :  { %642 = vmatpush.bf16.msra.mxu1 %v932_v31  ;;  %v1104_v49 = vld [vmem:[#allocation7 + $0xb4] sm:$0xf0]  ;;  %v1052_v51 = vor.u32 %v1138_v44, %v1051_v43  ;;  %v979_v52 = vld [vmem:[#allocation7 + $0x130] sm:$0xf]  ;;  %v852_v53 = vor.u32 %v1088_v47, %v851_v46  ;;  %v843_v58 = vld [vmem:[#allocation7 + $0x20] sm:$0xf] }
  0x19   :  { %v1120_v54 = vld [vmem:[#allocation7 + $0x134] sm:$0xf0]  ;;  %v1043_v55 = vld [vmem:[#allocation7 + $0x1b0] sm:$0xf]  ;;  %v916_v57 = vor.u32 %v1104_v49, %v915_v48  ;;  %v1086_v59 = vld [vmem:[#allocation7 + $0x24] sm:$0xf0] }
  0x1a   :  { %655 = vmatpush.bf16.msra.mxu2 %v996_v38  ;;  %v1136_v56 = vld [vmem:[#allocation7 + $0x1b4] sm:$0xf0]  ;;  %v907_v60 = vld [vmem:[#allocation7 + $0xa0] sm:$0xf]  ;;  %v1102_v61 = vld [vmem:[#allocation7 + $0xa4] sm:$0xf0]  ;;  %v980_v62 = vor.u32 %v1120_v54, %v979_v52  ;;  %v844_v1 = vor.u32 %v1086_v59, %v843_v58 }
  0x1b   :  { %668 = vmatpush.bf16.msra.mxu3 %v1060_v39  ;;  %630 = vmatpush.bf16.msra.mxu0 %v860_v41  ;;  %v1044_v63 = vor.u32 %v1136_v56, %v1043_v55  ;;  %v971_v0 = vld [vmem:[#allocation7 + $0x120] sm:$0xf]  ;;  %v1118_v2 = vld [vmem:[#allocation7 + $0x124] sm:$0xf0]  ;;  %v908_v5 = vor.u32 %v1102_v61, %v907_v60  ;;  %v835_v6 = vld [vmem:[#allocation7 + $0x10] sm:$0xf] }
  0x1c   :  { %643 = vmatpush.bf16.msra.mxu1 %v924_v45  ;;  %v1035_v3 = vld [vmem:[#allocation7 + $0x1a0] sm:$0xf]  ;;  %v1134_v4 = vld [vmem:[#allocation7 + $0x1a4] sm:$0xf0]  ;;  %v1084_v7 = vld [vmem:[#allocation7 + $0x14] sm:$0xf0]  ;;  %v972_v10 = vor.u32 %v1118_v2, %v971_v0 }
  0x1d   :  { %v899_v8 = vld [vmem:[#allocation7 + $0x90] sm:$0xf]  ;;  %v1100_v9 = vld [vmem:[#allocation7 + $0x94] sm:$0xf0]  ;;  %v1036_v11 = vor.u32 %v1134_v4, %v1035_v3  ;;  %v827_v12 = vld [vmem:[#allocation7] sm:$0xf]  ;;  %v836_v14 = vor.u32 %v1084_v7, %v835_v6 }
  0x1e   :  { %656 = vmatpush.bf16.msra.mxu2 %v988_v50  ;;  %v963_v13 = vld [vmem:[#allocation7 + $0x110] sm:$0xf]  ;;  %v1116_v15 = vld [vmem:[#allocation7 + $0x114] sm:$0xf0]  ;;  %v900_v18 = vor.u32 %v1100_v9, %v899_v8  ;;  %v1082_v19 = vld [vmem:[#allocation7 + $0x4] sm:$0xf0] }
  0x1f   :  { %669 = vmatpush.bf16.msra.mxu3 %v1052_v51  ;;  %631 = vmatpush.bf16.msra.mxu0 %v852_v53  ;;  %v1027_v16 = vld [vmem:[#allocation7 + $0x190] sm:$0xf]  ;;  %v1132_v17 = vld [vmem:[#allocation7 + $0x194] sm:$0xf0]  ;;  %v891_v20 = vld [vmem:[#allocation7 + $0x80] sm:$0xf]  ;;  %v964_v25 = vor.u32 %v1116_v15, %v963_v13  ;;  %v828_v30 = vor.u32 %v1082_v19, %v827_v12 }
  0x20   :  { %644 = vmatpush.bf16.msra.mxu1 %v916_v57  ;;  %v1098_v21 = vld [vmem:[#allocation7 + $0x84] sm:$0xf0]  ;;  %v1095_v22 = vld [vmem:[#allocation7 + $0x74] sm:$0xf]  ;;  %v885_v23 = vld [vmem:[#allocation7 + $0x78] sm:$0xf0]  ;;  %v1028_v26 = vor.u32 %v1132_v17, %v1027_v16 }
  0x21   :  { %v1111_v24 = vld [vmem:[#allocation7 + $0xf4] sm:$0xf]  ;;  %v949_v27 = vld [vmem:[#allocation7 + $0xf8] sm:$0xf0]  ;;  %v955_v28 = vld [vmem:[#allocation7 + $0x100] sm:$0xf]  ;;  %v892_v34 = vor.u32 %v1098_v21, %v891_v20  ;;  %v888_v35 = vor.u32 %v1095_v22, %v885_v23 }
  0x22   :  { %657 = vmatpush.bf16.msra.mxu2 %v980_v62  ;;  %v1114_v29 = vld [vmem:[#allocation7 + $0x104] sm:$0xf0]  ;;  %v1019_v31 = vld [vmem:[#allocation7 + $0x180] sm:$0xf]  ;;  %v1127_v33 = vld [vmem:[#allocation7 + $0x174] sm:$0xf]  ;;  %v952_v39 = vor.u32 %v1111_v24, %v949_v27 }
  0x23   :  { %670 = vmatpush.bf16.msra.mxu3 %v1044_v63  ;;  %632 = vmatpush.bf16.msra.mxu0 %v844_v1  ;;  %v1130_v32 = vld [vmem:[#allocation7 + $0x184] sm:$0xf0]  ;;  %v1013_v36 = vld [vmem:[#allocation7 + $0x178] sm:$0xf0]  ;;  %v1143_v37 = vld [vmem:[#allocation7 + $0x1f4] sm:$0xf]  ;;  %v956_v43 = vor.u32 %v1114_v29, %v955_v28 }
  0x24   :  { %645 = vmatpush.bf16.msra.mxu1 %v908_v5  ;;  %v1077_v38 = vld [vmem:[#allocation7 + $0x1f8] sm:$0xf0]  ;;  %v1093_v40 = vld [vmem:[#allocation7 + $0x64] sm:$0xf]  ;;  %v877_v41 = vld [vmem:[#allocation7 + $0x68] sm:$0xf0]  ;;  %v1020_v44 = vor.u32 %v1130_v32, %v1019_v31  ;;  %v1016_v48 = vor.u32 %v1127_v33, %v1013_v36 }
  0x25   :  { %v1109_v42 = vld [vmem:[#allocation7 + $0xe4] sm:$0xf]  ;;  %v941_v45 = vld [vmem:[#allocation7 + $0xe8] sm:$0xf0]  ;;  %v44_v47 = vld [vmem:[#allocation4] sm:$0xff]  ;;  %v1080_v49 = vor.u32 %v1143_v37, %v1077_v38  ;;  %v880_v52 = vor.u32 %v1093_v40, %v877_v41  ;;  %vm59_vm0 = vcmask 1043456  }
  0x26   :  { %658 = vmatpush.bf16.msra.mxu2 %v972_v10  ;;  %v1125_v46 = vld [vmem:[#allocation7 + $0x164] sm:$0xf]  ;;  %v1005_v50 = vld [vmem:[#allocation7 + $0x168] sm:$0xf0]  ;;  %v45_v51 = vld [vmem:[#allocation4 + $0x8] sm:$0xff]  ;;  %v944_v55 = vor.u32 %v1109_v42, %v941_v45  ;;  %vm137_vm1 = vcmask 1041408  }
  0x27   :  { %671 = vmatpush.bf16.msra.mxu3 %v1036_v11  ;;  %633 = vmatpush.bf16.msra.mxu0 %v836_v14  ;;  %48 = vst [vmem:[#allocation1] ss:$2 sm:$0xff] %v44_v47  ;;  %v1141_v53 = vld [vmem:[#allocation7 + $0x1e4] sm:$0xf]  ;;  %v1069_v54 = vld [vmem:[#allocation7 + $0x1e8] sm:$0xf0]  ;;  %v1008_v62 = vor.u32 %v1125_v46, %v1005_v50 }
  0x28   :  { %646 = vmatpush.bf16.msra.mxu1 %v900_v18  ;;  %52 = vst [vmem:[#allocation1 + $0x10] ss:$2 sm:$0xff] %v45_v51  ;;  %v1091_v56 = vld [vmem:[#allocation7 + $0x54] sm:$0xf]  ;;  %v869_v57 = vld [vmem:[#allocation7 + $0x58] sm:$0xf0]  ;;  %v1072_v63 = vor.u32 %v1141_v53, %v1069_v54 }
  0x29   :  { %v1107_v58 = vld [vmem:[#allocation7 + $0xd4] sm:$0xf]  ;;  %v933_v59 = vld [vmem:[#allocation7 + $0xd8] sm:$0xf0]  ;;  %v1089_v60 = vld [vmem:[#allocation7 + $0x44] sm:$0xf]  ;;  %v872_v3 = vor.u32 %v1091_v56, %v869_v57 }
  0x2a   :  { %659 = vmatpush.bf16.msra.mxu2 %v964_v25  ;;  %v861_v61 = vld [vmem:[#allocation7 + $0x48] sm:$0xf0]  ;;  %v1105_v0 = vld [vmem:[#allocation7 + $0xc4] sm:$0xf]  ;;  %v1123_v2 = vld [vmem:[#allocation7 + $0x154] sm:$0xf]  ;;  %v936_v7 = vor.u32 %v1107_v58, %v933_v59 }
  0x2b   :  { %672 = vmatpush.bf16.msra.mxu3 %v1028_v26  ;;  %634 = vmatpush.bf16.msra.mxu0 %v828_v30  ;;  %v925_v1 = vld [vmem:[#allocation7 + $0xc8] sm:$0xf0]  ;;  %v997_v4 = vld [vmem:[#allocation7 + $0x158] sm:$0xf0]  ;;  %v1139_v5 = vld [vmem:[#allocation7 + $0x1d4] sm:$0xf]  ;;  %v864_v8 = vor.u32 %v1089_v60, %v861_v61 }
  0x2c   :  { %647 = vmatpush.bf16.msra.mxu1 %v892_v34  ;;  %v1061_v6 = vld [vmem:[#allocation7 + $0x1d8] sm:$0xf0]  ;;  %v928_v11 = vor.u32 %v1105_v0, %v925_v1  ;;  %v1000_v12 = vor.u32 %v1123_v2, %v997_v4  ;;  %vm145_vm2 = vcmask 1041409   ;;  %vm147_vm3 = vcmask 1043459   ;;  %v1103_v58 = vld [vmem:[#allocation7 + $0xb4] sm:$0xf] }
  0x2d   :  { %v1064_v13 = vor.u32 %v1139_v5, %v1061_v6  ;;  %v853_v53 = vld [vmem:[#allocation7 + $0x38] sm:$0xf0]  ;;  %v1121_v0 = vld [vmem:[#allocation7 + $0x144] sm:$0xf]  ;;  %v989_v1 = vld [vmem:[#allocation7 + $0x148] sm:$0xf0] }
  0x2e   :  { %660 = vmatpush.bf16.msra.mxu2 %v956_v43  ;;  %v49_v9 = vld.sshfl [vmem:[#allocation1] sm:$0xff pattern:$0x75316420]  ;;  %v50_v10 = vld.sshfl [vmem:[#allocation1 + $0x8] sm:$0xff pattern:$0x75316420] }
  0x2f   :  { %679 = vmatpush.bf16.msrb.mxu0 %v888_v35  ;;  %673 = vmatpush.bf16.msra.mxu3 %v1020_v44  ;;  %v53_v14 = vld.sshfl [vmem:[#allocation1 + $0x10] sm:$0xff pattern:$0x75316420]  ;;  %v54_v15 = vld.sshfl [vmem:[#allocation1 + $0x18] sm:$0xff pattern:$0x75316420] }
  0x30   :  { %692 = vmatpush.bf16.msrb.mxu1 %v952_v39  ;;  %v60_v16 = vsel %vm59_vm0, %v49_v9, 0.0  ;;  %v67_v17 = vsel %vm59_vm0, %v50_v10, 0.0  ;;  %v74_v18 = vsel %vm59_vm0, %v53_v14, 0.0  ;;  %v81_v19 = vsel %vm59_vm0, %v54_v15, 0.0  ;;  %88 = vst [vmem:[#allocation1] ss:$2 sm:$0xff] %v44_v47 }
  0x31   :  { %v61_v20 = vrot.slane %v60_v16, 4  ;;  %v68_v21 = vrot.slane %v67_v17, 4  ;;  %v75_v22 = vrot.slane %v74_v18, 4  ;;  %v82_v23 = vrot.slane %v81_v19, 4  ;;  %92 = vst [vmem:[#allocation1 + $0x10] ss:$2 sm:$0xff] %v45_v51 }
  0x32   :  { %705 = vmatpush.bf16.msrb.mxu2 %v1016_v48  ;;  %v917_v59 = vld [vmem:[#allocation7 + $0xb8] sm:$0xf0]  ;;  %v1137_v6 = vld [vmem:[#allocation7 + $0x1c4] sm:$0xf]  ;;  %vm149_vm4 = vcmask 1045509   ;;  %vm151_vm5 = vcmask 1047559  }
  0x33   :  { %718 = vmatpush.bf16.msrb.mxu3 %v1080_v49  ;;  %680 = vmatpush.bf16.msrb.mxu0 %v880_v52  ;;  %v62_v24 = vadd.f32 %v61_v20, %v60_v16  ;;  %v69_v25 = vadd.f32 %v68_v21, %v67_v17  ;;  %v76_v26 = vadd.f32 %v75_v22, %v74_v18  ;;  %v1087_v52 = vld [vmem:[#allocation7 + $0x34] sm:$0xf]  ;;  %v1085_v21 = vld [vmem:[#allocation7 + $0x24] sm:$0xf]  ;;  %v845_v22 = vld [vmem:[#allocation7 + $0x28] sm:$0xf0] }
  0x34   :  { %693 = vmatpush.bf16.msrb.mxu1 %v944_v55  ;;  %v83_v27 = vadd.f32 %v82_v23, %v81_v19  ;;  %v920_v5 = vor.u32 %v1103_v58, %v917_v59  ;;  %v1081_v58 = vld [vmem:[#allocation7 + $0x4] sm:$0xf]  ;;  %s1247_s28 = smov [#allocation9]   ;;  %s814_s4 = sshll.u32 %s1314_s2, 4  ;;  %s815_s4 = int_to_ptr.hbm [resolvable:$true] %s814_s4 }
  0x35   :  { %v63_v28 = vrot.slane %v62_v24, 2  ;;  %v70_v29 = vrot.slane %v69_v25, 2  ;;  %v77_v30 = vrot.slane %v76_v26, 2  ;;  %s812_s29 = sshll.u32 %s1247_s28, 4  ;;  %s813_s29 = int_to_ptr.vmem [resolvable:$true] %s812_s29 }
  0x36   :  { %706 = vmatpush.bf16.msrb.mxu2 %v1008_v62  ;;  %v84_v31 = vrot.slane %v83_v27, 2 }
  0x37   :  { %719 = vmatpush.bf16.msrb.mxu3 %v1072_v63  ;;  %681 = vmatpush.bf16.msrb.mxu0 %v872_v3  ;;  %v64_v32 = vadd.f32 %v63_v28, %v62_v24  ;;  %v71_v33 = vadd.f32 %v70_v29, %v69_v25  ;;  %v78_v34 = vadd.f32 %v77_v30, %v76_v26  ;;  %v89_v35 = vld.sshfl [vmem:[#allocation1] sm:$0xff pattern:$0x75316420]  ;;  %v90_v36 = vld.sshfl [vmem:[#allocation1 + $0x8] sm:$0xff pattern:$0x75316420] }
  0x38   :  { %694 = vmatpush.bf16.msrb.mxu1 %v936_v7  ;;  %v85_v37 = vadd.f32 %v84_v31, %v83_v27  ;;  %v93_v38 = vld.sshfl [vmem:[#allocation1 + $0x10] sm:$0xff pattern:$0x75316420]  ;;  %v94_v39 = vld.sshfl [vmem:[#allocation1 + $0x18] sm:$0xff pattern:$0x75316420]  ;;  %v856_v63 = vor.u32 %v1087_v52, %v853_v53  ;;  %v848_v26 = vor.u32 %v1085_v21, %v845_v22 }
  0x39   :  { %v65_v40 = vrot.slane %v64_v32, 1  ;;  %v72_v41 = vrot.slane %v71_v33, 1  ;;  %v79_v42 = vrot.slane %v78_v34, 1  ;;  %v99_v43 = vsel %vm59_vm0, %v89_v35, -inf  ;;  %v1053_v7 = vld [vmem:[#allocation7 + $0x1c8] sm:$0xf0] }
  0x3a   :  { %707 = vmatpush.bf16.msrb.mxu2 %v1000_v12  ;;  %v86_v44 = vrot.slane %v85_v37, 1  ;;  %v100_v45 = vrot.slane %v99_v43, 4  ;;  %v106_v46 = vsel %vm59_vm0, %v90_v36, -inf  ;;  %v113_v47 = vsel %vm59_vm0, %v93_v38, -inf  ;;  %v1101_v27 = vld [vmem:[#allocation7 + $0xa4] sm:$0xf] }
  0x3b   :  { %720 = vmatpush.bf16.msrb.mxu3 %v1064_v13  ;;  %682 = vmatpush.bf16.msrb.mxu0 %v864_v8  ;;  %v66_v48 = vadd.f32 %v65_v40, %v64_v32  ;;  %v73_v49 = vadd.f32 %v72_v41, %v71_v33  ;;  %v80_v50 = vadd.f32 %v79_v42, %v78_v34  ;;  %v107_v51 = vrot.slane %v106_v46, 4  ;;  %v909_v28 = vld [vmem:[#allocation7 + $0xa8] sm:$0xf0]  ;;  %v1119_v32 = vld [vmem:[#allocation7 + $0x134] sm:$0xf] }
  0x3c   :  { %695 = vmatpush.bf16.msrb.mxu1 %v928_v11  ;;  %v87_v54 = vadd.f32 %v86_v44, %v85_v37  ;;  %v101_v55 = vmax.f32 %v99_v43, %v100_v45  ;;  %v114_v56 = vrot.slane %v113_v47, 4  ;;  %v120_v57 = vsel %vm59_vm0, %v94_v39, -inf  ;;  %v981_v33 = vld [vmem:[#allocation7 + $0x138] sm:$0xf0]  ;;  %v1135_v38 = vld [vmem:[#allocation7 + $0x1b4] sm:$0xf] }
  0x3d   :  { %v108_v60 = vmax.f32 %v106_v46, %v107_v51  ;;  %v121_v61 = vrot.slane %v120_v57, 4  ;;  %v135_v62 = vrot.slane %v73_v49, 6  ;;  %v992_v11 = vor.u32 %v1121_v0, %v989_v1  ;;  %v1045_v39 = vld [vmem:[#allocation7 + $0x1b8] sm:$0xf0]  ;;  %v1083_v43 = vld [vmem:[#allocation7 + $0x14] sm:$0xf] }
  0x3e   :  { %v102_v2 = vrot.slane %v101_v55, 2  ;;  %v115_v3 = vmax.f32 %v113_v47, %v114_v56  ;;  %v136_v4 = vrot.slane %v87_v54, 6  ;;  %v1056_v15 = vor.u32 %v1137_v6, %v1053_v7  ;;  %v837_v44 = vld [vmem:[#allocation7 + $0x18] sm:$0xf0]  ;;  %v1099_v45 = vld [vmem:[#allocation7 + $0x94] sm:$0xf] }
  0x3f   :  { %v109_v8 = vrot.slane %v108_v60, 2  ;;  %v122_v9 = vmax.f32 %v120_v57, %v121_v61  ;;  %v138_v10 = vsel %vm137_vm1, %v66_v48, %v135_v62  ;;  %683 = vmatpush.bf16.msrb.mxu0 %v856_v63  ;;  %708 = vmatpush.bf16.msrb.mxu2 %v992_v11  ;;  %v912_v31 = vor.u32 %v1101_v27, %v909_v28  ;;  %v1117_v52 = vld [vmem:[#allocation7 + $0x124] sm:$0xf]  ;;  %v973_v53 = vld [vmem:[#allocation7 + $0x128] sm:$0xf0] }
  0x40   :  { %v103_v12 = vmax.f32 %v101_v55, %v102_v2  ;;  %v116_v13 = vrot.slane %v115_v3, 2  ;;  %v139_v14 = vsel %vm137_vm1, %v80_v50, %v136_v4  ;;  %696 = vmatpush.bf16.msrb.mxu1 %v920_v5  ;;  %721 = vmatpush.bf16.msrb.mxu3 %v1056_v15  ;;  %v984_v37 = vor.u32 %v1119_v32, %v981_v33  ;;  %v901_v50 = vld [vmem:[#allocation7 + $0x98] sm:$0xf0]  ;;  %v1133_v54 = vld [vmem:[#allocation7 + $0x1a4] sm:$0xf] }
  0x41   :  { %v110_v16 = vmax.f32 %v108_v60, %v109_v8  ;;  %v123_v17 = vrot.slane %v122_v9, 2  ;;  %v144_v18 = vrot.slane %v139_v14, 7  ;;  %v1048_v42 = vor.u32 %v1135_v38, %v1045_v39  ;;  %v1037_v57 = vld [vmem:[#allocation7 + $0x1a8] sm:$0xf0]  ;;  %v1097_v61 = vld [vmem:[#allocation7 + $0x84] sm:$0xf] }
  0x42   :  { %v104_v19 = vrot.slane %v103_v12, 1  ;;  %v117_v20 = vmax.f32 %v115_v3, %v116_v13  ;;  %v840_v49 = vor.u32 %v1083_v43, %v837_v44  ;;  %v904_v51 = vor.u32 %v1099_v45, %v901_v50  ;;  %v829_v60 = vld [vmem:[#allocation7 + $0x8] sm:$0xf0]  ;;  %v1115_v3 = vld [vmem:[#allocation7 + $0x114] sm:$0xf] }
  0x43   :  { %v111_v23 = vrot.slane %v110_v16, 1  ;;  %v124_v24 = vmax.f32 %v122_v9, %v123_v17  ;;  %v146_v25 = vsel %vm145_vm2, %v144_v18, %v138_v10  ;;  %684 = vmatpush.bf16.msrb.mxu0 %v848_v26  ;;  %709 = vmatpush.bf16.msrb.mxu2 %v984_v37  ;;  %v976_v56 = vor.u32 %v1117_v52, %v973_v53  ;;  %v893_v62 = vld [vmem:[#allocation7 + $0x88] sm:$0xf0]  ;;  %v965_v4 = vld [vmem:[#allocation7 + $0x118] sm:$0xf0] }
  0x44   :  { %v118_v29 = vrot.slane %v117_v20, 1  ;;  %v148_v30 = vsel %vm147_vm3, %v144_v18, %v146_v25  ;;  %v105_v40 = vmax.f32 %v103_v12, %v104_v19  ;;  %697 = vmatpush.bf16.msrb.mxu1 %v912_v31  ;;  %722 = vmatpush.bf16.msrb.mxu3 %v1048_v42  ;;  %v1040_v59 = vor.u32 %v1133_v54, %v1037_v57  ;;  %v1131_v5 = vld [vmem:[#allocation7 + $0x194] sm:$0xf]  ;;  %v1029_v8 = vld [vmem:[#allocation7 + $0x198] sm:$0xf0] }
  0x45   :  { %v112_v34 = vmax.f32 %v110_v16, %v111_v23  ;;  %v125_v35 = vrot.slane %v124_v24, 1  ;;  %v150_v36 = vsel %vm149_vm4, %v144_v18, %v148_v30  ;;  %v832_v1 = vor.u32 %v1081_v58, %v829_v60  ;;  %v1113_v9 = vld [vmem:[#allocation7 + $0x104] sm:$0xf]  ;;  %v957_v11 = vld [vmem:[#allocation7 + $0x108] sm:$0xf0] }
  0x46   :  { %v152_v41 = vsel %vm151_vm5, %v144_v18, %v150_v36  ;;  %v119_v46 = vmax.f32 %v117_v20, %v118_v29  ;;  %v896_v2 = vor.u32 %v1097_v61, %v893_v62  ;;  %v968_v7 = vor.u32 %v1115_v3, %v965_v4  ;;  %v1129_v12 = vld [vmem:[#allocation7 + $0x184] sm:$0xf]  ;;  %v1021_v13 = vld [vmem:[#allocation7 + $0x188] sm:$0xf0] }
  0x47   :  { %v126_v47 = vmax.f32 %v124_v24, %v125_v35  ;;  %154 = vst [vmem:[#allocation2] sm:$0xf] %v152_v41  ;;  %v159_v48 = vrot.slane %v112_v34, 6  ;;  %685 = vmatpush.bf16.msrb.mxu0 %v840_v49  ;;  %710 = vmatpush.bf16.msrb.mxu2 %v976_v56  ;;  %v1032_v10 = vor.u32 %v1131_v5, %v1029_v8  ;;  %v1246_v56 = vmov 512.0  }
  0x48   :  { %698 = vmatpush.bf16.msrb.mxu1 %v904_v51  ;;  %723 = vmatpush.bf16.msrb.mxu3 %v1040_v59  ;;  %v960_v18 = vor.u32 %v1113_v9, %v957_v11  ;;  %v1024_v20 = vor.u32 %v1129_v12, %v1021_v13  ;;  %1160 = vrcp.f32 %v1246_v56 }
  0x49   :  { %v160_v55 = vrot.slane %v126_v47, 6  ;;  %v161_v63 = vsel %vm137_vm1, %v105_v40, %v159_v48 }
  0x4b   :  { %v162_v0 = vsel %vm137_vm1, %v119_v46, %v160_v55  ;;  %686 = vmatpush.bf16.msrb.mxu0 %v832_v1  ;;  %711 = vmatpush.bf16.msrb.mxu2 %v968_v7 }
  0x4c   :  { %v165_v6 = vrot.slane %v162_v0, 7  ;;  %699 = vmatpush.bf16.msrb.mxu1 %v896_v2  ;;  %724 = vmatpush.bf16.msrb.mxu3 %v1032_v10 }
  0x4e   :  { %v166_v14 = vsel %vm145_vm2, %v165_v6, %v161_v63  ;;  %v224_v15 = vld [vmem:[#allocation2] sm:$0xf]  ;;  %v1161_v57 = vpop.eup %1160 }
  0x4f   :  { %v167_v16 = vsel %vm147_vm3, %v165_v6, %v166_v14  ;;  %v225_v17 = vmul.f32 0.25, %v224_v15  ;;  %712 = vmatpush.bf16.msrb.mxu2 %v960_v18  ;;  %v745_v58 = vmul.f32 512.0, %v1161_v57  ;;  %vm749_vm6 = vweird.f32 %v1161_v57 }
  0x50   :  { %v168_v19 = vsel %vm149_vm4, %v165_v6, %v167_v16  ;;  %725 = vmatpush.bf16.msrb.mxu3 %v1024_v20 }
  0x51   :  { %v169_v21 = vsel %vm151_vm5, %v165_v6, %v168_v19  ;;  %228 = vst [vmem:[#allocation1] ss:$4 sm:$0xff] %v225_v17  ;;  %v746_v59 = vsub.f32 1.0, %v745_v58 }
  0x52   :  { %171 = vst [vmem:[#allocation3] sm:$0xf] %v169_v21 }
  0x53   :  { %v747_v63 = vmul.f32 %v1161_v57, %v746_v59 }
  0x55   :  { %v748_v2 = vadd.f32 %v1161_v57, %v747_v63 }
  0x57   :  { %v750_v5 = vsel %vm749_vm6, %v1161_v57, %v748_v2 }
  0x58   :  { %v229_v22 = vld.sshfl [vmem:[#allocation1] sm:$0xff pattern:$0x73625140]  ;;  %v230_v23 = vld.sshfl [vmem:[#allocation1 + $0x8] sm:$0xff pattern:$0x73625140] }
  0x59   :  { %v239_v24 = vpack.c.bf16 %v229_v22, %v229_v22  ;;  %v240_v25 = vpack.c.bf16 %v230_v23, %v230_v23  ;;  %v226_v26 = vld [vmem:[#allocation3] sm:$0xf] }
  0x5a   :  { %234 = vst [vmem:[#allocation1] ss:$4 sm:$0xff] %v226_v26 }
  0x5b   :  { %635 = vmatmul.bf16.vlgmr.msra.gmra.mxu0 %v239_v24  ;;  %648 = vmatmul.bf16.vlgmr.msra.gmra.mxu1 %v240_v25 }
  0x61   :  { %v235_v27 = vld.sshfl [vmem:[#allocation1] sm:$0xff pattern:$0x73625140]  ;;  %v236_v28 = vld.sshfl [vmem:[#allocation1 + $0x8] sm:$0xff pattern:$0x73625140] }
  0x62   :  { %v241_v29 = vpack.c.bf16 %v235_v27, %v235_v27  ;;  %v242_v30 = vpack.c.bf16 %v236_v28, %v236_v28 }
  0x64   :  { %661 = vmatmul.bf16.vlgmr.msra.gmra.mxu2 %v241_v29  ;;  %674 = vmatmul.bf16.vlgmr.msra.gmra.mxu3 %v242_v30 }
  0x6b   :  { %687 = vmatmul.bf16.vlgmr.msrb.gmra.mxu0 %v239_v24  ;;  %700 = vmatmul.bf16.vlgmr.msrb.gmra.mxu1 %v240_v25 }
  0x74   :  { %713 = vmatmul.bf16.vlgmr.msrb.gmra.mxu2 %v241_v29  ;;  %726 = vmatmul.bf16.vlgmr.msrb.gmra.mxu3 %v242_v30 }
  0xd8   :  { %v636_v31 = vpop.f32.mrf.mxu0  ;;  %v649_v32 = vpop.f32.mrf.mxu1 }
  0xd9   :  { %v650_v41 = vadd.f32 %v649_v32, %v636_v31 }
  0xe0   :  { %v638_v33 = vpop.f32.mrf.mxu0  ;;  %v651_v34 = vpop.f32.mrf.mxu1 }
  0xe1   :  { %v1248_v33 = vmov 2.0  }
  0xe7   :  { %v662_v35 = vpop.f32.mrf.mxu2  ;;  %v675_v36 = vpop.f32.mrf.mxu3 }
  0xe8   :  { %v688_v37 = vpop.f32.mrf.mxu0  ;;  %v701_v38 = vpop.f32.mrf.mxu1  ;;  %v663_v44 = vadd.f32 %v662_v35, %v650_v41 }
  0xe9   :  { %v702_v45 = vadd.f32 %v701_v38, %v688_v37 }
  0xea   :  { %v1290_v48 = vadd.f32 %v675_v36, %v663_v44 }
  0xec   :  { %v732_v51 = vsel %vm137_vm1, %v1290_v48, 0.0 }
  0xef   :  { %v664_v39 = vpop.f32.mrf.mxu2  ;;  %v677_v40 = vpop.f32.mrf.mxu3 }
  0xf0   :  { %v690_v42 = vpop.f32.mrf.mxu0  ;;  %v703_v43 = vpop.f32.mrf.mxu1 }
  0xf7   :  { %v714_v46 = vpop.f32.mrf.mxu2  ;;  %v727_v47 = vpop.f32.mrf.mxu3 }
  0xf8   :  { %v715_v49 = vadd.f32 %v714_v46, %v702_v45 }
  0xfa   :  { %v1292_v50 = vadd.f32 %v727_v47, %v715_v49 }
  0xfc   :  { %v733_v52 = vsel %vm137_vm1, %v1292_v50, 0.0 }
  0xfd   :  { %v734_v53 = vadd.f32 %v733_v52, %v732_v51 }
  0xff   :  { %v716_v54 = vpop.f32.mrf.mxu2  ;;  %v729_v55 = vpop.f32.mrf.mxu3  ;;  %735 = vadd.xlane.f32.xlu0 %v734_v53 }
 0x172   :  { %v736_v60 = vpop.xlane.xlu0 %735 }
 0x173   :  { %v737_v61 = vrot.slane %v736_v60, 4 }
 0x175   :  { %v738_v62 = vadd.f32 %v737_v61, %v736_v60 }
 0x177   :  { %v739_v0 = vrot.slane %v738_v62, 2 }
 0x179   :  { %v740_v1 = vadd.f32 %v739_v0, %v738_v62 }
 0x17b   :  { %v741_v3 = vrot.slane %v740_v1, 1 }
 0x17d   :  { %v742_v4 = vadd.f32 %v741_v3, %v740_v1 }
 0x17f   :  { %1145 = vpush %v742_v4 }
 0x180   :  { %1147 = vpush %v750_v5 }
 0x1b0   :  { %s1146_s0 = spop %1145 }
 0x1b1   :  { %s1148_s1 = spop %1147 }
 0x1b2   :  { %s1298_s21 = smul.f32 %s1148_s1, %s1146_s0 }
 0x1b4   :  { %v753_v6 = vstv %s1298_s21 }
 0x1b5   :  { %v754_v7 = vsub.f32 %v1290_v48, %v753_v6  ;;  %v755_v8 = vsub.f32 %v1292_v50, %v753_v6 }
 0x1b7   :  { %v756_v9 = vmul.f32 %v754_v7, %v754_v7  ;;  %v757_v10 = vmul.f32 %v755_v8, %v755_v8 }
 0x1b9   :  { %v758_v11 = vsel %vm137_vm1, %v756_v9, 0.0  ;;  %v759_v12 = vsel %vm137_vm1, %v757_v10, 0.0 }
 0x1ba   :  { %v760_v13 = vadd.f32 %v759_v12, %v758_v11 }
 0x1bc   :  { %761 = vadd.xlane.f32.xlu0 %v760_v13 }
 0x22f   :  { %v762_v14 = vpop.xlane.xlu0 %761 }
 0x230   :  { %v763_v15 = vrot.slane %v762_v14, 4 }
 0x232   :  { %v764_v16 = vadd.f32 %v763_v15, %v762_v14 }
 0x234   :  { %v765_v17 = vrot.slane %v764_v16, 2 }
 0x236   :  { %v766_v18 = vadd.f32 %v765_v17, %v764_v16 }
 0x238   :  { %v767_v19 = vrot.slane %v766_v18, 1 }
 0x23a   :  { %v768_v20 = vadd.f32 %v767_v19, %v766_v18 }
 0x23c   :  { %1149 = vpush %v768_v20 }
 0x26d   :  { %s1150_s22 = spop %1149 }
 0x26e   :  { %s778_s23 = smul.f32 %s1150_s22, %s1148_s1 }
 0x270   :  { %s779_s24 = sadd.f32 1e-05, %s778_s23 }
 0x272   :  { %v780_v21 = vstv %s779_s24 }
 0x273   :  { %1162 = vrsqrt.f32 %v780_v21  ;;  %vm788_vm7 = vcmp.eq.f32.partialorder %v780_v21, inf  ;;  %v791_v29 = vand.u32 2147483648, %v780_v21  ;;  %vm790_vm8 = vcmp.eq.f32.partialorder %v780_v21, 0.0 }
 0x279   :  { %v1163_v22 = vpop.eup %1162 }
 0x27a   :  { %v782_v23 = vmul.f32 %v1163_v22, %v780_v21 }
 0x27c   :  { %v783_v24 = vmul.f32 %v1163_v22, %v782_v23 }
 0x27e   :  { %v784_v25 = vmul.f32 0.5, %v783_v24 }
 0x280   :  { %v785_v26 = vsub.f32 1.5, %v784_v25 }
 0x282   :  { %v786_v27 = vmul.f32 %v1163_v22, %v785_v26 }
 0x284   :  { %v787_v28 = vmul.f32 %v786_v27, %v780_v21 }
 0x286   :  { %v789_v30 = vsel %vm788_vm7, %v780_v21, %v787_v28 }
 0x287   :  { %v792_v31 = vsel %vm790_vm8, %v791_v29, %v789_v30 }
 0x288   :  { %1151 = vpush %v792_v31 }
 0x2b9   :  { %s1152_s25 = spop %1151 }
 0x2ba   :  { %s794_s26 = smul.f32 0.0, %s1152_s25 }
 0x2bc   :  { %s795_s27 = sadd.f32 %s794_s26, %s1298_s21 }
 0x2be   :  { %v796_v32 = vstv %s795_s27 }
 0x2bf   :  { %vm797_vm9 = vcmp.gt.f32.partialorder %v1290_v48, %v796_v32  ;;  %vm798_vm10 = vcmp.gt.f32.partialorder %v1292_v50, %v796_v32 }
 0x2c0   :  { %v800_v34 = vsel %vm798_vm10, 1.0, %v1248_v33  ;;  %v799_v36 = vsel %vm797_vm9, 1.0, %v1248_v33 }
 0x2c1   :  { %v803_v35 = vrot.slane %v800_v34, 6 }
 0x2c3   :  { %v804_v37 = vsel %vm137_vm1, %v799_v36, %v803_v35 }
 0x2c4   :  { %806 = vst [vmem:[#allocation9] sm:$0xf] %v804_v37 }
 0x2c5   :  { %817 = dma.vmem_to_hbm [thread:$0]  %s813_s29, 64, %s815_s4, [#allocation6]  }
 0x2c6   :  { %1240 = dma.done.wait [#allocation6], 64  }
 0x2c7   :  { %1241 = vsyncadd [#allocation6], 4294967232 }
 0x2c8   :  { %822 = vsyncpa [#allocation5], 1 }
 0x2c9   :  { %823 = vsyncpa [#allocation8], 1 }
 0x2ca   :  { %824 = vsyncpa [#allocation6], 1 }

</bundles_post_ra>
